<compile_context>
chip_gen: v6e
topology: v6e:2x2x1
jax: 0.10.0
libtpu: 0.0.40
codegen_flags: <defaults>
</compile_context>

<pallas_src>
import functools

import jax
import jax.numpy as jnp
from jax import lax
from jax.experimental import pallas as pl
from jax.experimental.pallas import tpu as pltpu

ALPHA = 0.4
GAMMA = 2.0


def _round_up(x, m):
    return ((x + m - 1) // m) * m


def _tpu_vmem_bytes():
    """Per-core VMEM capacity; conservative (v7x-sized) fallback if unknown."""
    try:
        info = pltpu.get_tpu_info()
        for attr in ("vmem_capacity_bytes", "vmem_bytes", "vmem_size_bytes"):
            v = getattr(info, attr, None)
            if v:
                return int(v)
    except Exception:
        pass
    return 64 * 1024 * 1024


def _focal_loss_kernel(targets_ref, logits_ref, out_ref, m_sc, l_sc, t_sc, *,
                       alpha, gamma, n_true, c_true, tn, tc, mask_classes):
    """Grid point (i, j): row tile i, class tile j (class axis is the reduction).

    targets_ref: (1, TN)  int32 class indices (lane-dense)
    logits_ref : (TN, TC) logits, input dtype (bf16 stays bf16 for compare/max)
    out_ref    : (1, 1)   f32 partial sum of focal loss for row tile i
    m_sc/l_sc/t_sc: (TN, 1) f32 scratch -- running max, exp-sum, target logit
    """
    i = pl.program_id(0)
    j = pl.program_id(1)

    @pl.when(j == 0)
    def _init():
        m_sc[...] = jnp.full(m_sc.shape, -jnp.inf, jnp.float32)
        l_sc[...] = jnp.zeros(l_sc.shape, jnp.float32)
        t_sc[...] = jnp.zeros(t_sc.shape, jnp.float32)

    raw = logits_ref[...]                                  # (TN, TC), input dtype
    tgt_col = targets_ref[...].reshape(tn, 1)              # (TN, 1) int32

    col_ids = j * tc + lax.broadcasted_iota(jnp.int32, (tn, tc), 1)
    if mask_classes:
        # padded class columns: exclude from max / exp-sum (finite sentinel,
        # exp underflows to exactly 0; avoids inf-inf NaN paths)
        neg = jnp.array(-1e30, dtype=raw.dtype)
        raw = jnp.where(col_ids < c_true, raw, neg)

    # one-hot gather of the target logit (no dynamic gather on TPU): compare
    # and select stay in the input dtype, only the (TN,1) result is cast.
    onehot = col_ids == tgt_col
    t_part = jnp.sum(jnp.where(onehot, raw, jnp.zeros_like(raw)),
                     axis=-1, keepdims=True).astype(jnp.float32)
    t_sc[...] += t_part

    # online (flash-style) log-sum-exp accumulation across class tiles
    m_prev = m_sc[...]
    m_cur = jnp.max(raw, axis=-1, keepdims=True).astype(jnp.float32)
    m_new = jnp.maximum(m_prev, m_cur)
    l_part = jnp.sum(jnp.exp(raw.astype(jnp.float32) - m_new),
                     axis=-1, keepdims=True)
    l_sc[...] = l_sc[...] * jnp.exp(m_prev - m_new) + l_part
    m_sc[...] = m_new

    @pl.when(j == pl.num_programs(1) - 1)
    def _finalize():
        lse = m_sc[...] + jnp.log(l_sc[...])
        # clamp guards FP rounding so pt = exp(-ce) <= 1 ((1-pt)**gamma stays safe)
        ce = jnp.maximum(lse - t_sc[...], 0.0)             # (TN, 1)
        pt = jnp.exp(-ce)
        om = 1.0 - pt
        g = float(gamma)
        if g == 2.0:
            mod = om * om                                  # VPU-only (module default)
        elif g == 1.0:
            mod = om
        elif g == 0.0:
            mod = jnp.ones_like(om)
        elif g.is_integer() and g > 0:
            mod = om
            for _ in range(int(g) - 1):
                mod = mod * om
        else:
            mod = jnp.power(jnp.maximum(om, 0.0), g)
        f = alpha * mod * ce                               # (TN, 1)

        # mask rows past the true batch size (padding of the last row tile)
        row_ids = i * tn + lax.broadcasted_iota(jnp.int32, (tn, 1), 0)
        f = jnp.where(row_ids < n_true, f, 0.0)

        out_ref[...] = jnp.sum(f, axis=0, keepdims=True)   # (1, 1) partial sum


def focal_loss(logits, targets, alpha=ALPHA, gamma=GAMMA,
               block_rows=None, block_classes=None):
    """logits: (N, C) float (f32/bf16); targets: (N,) int. Returns scalar f32 mean."""
    N, C = logits.shape
    itemsize = jnp.dtype(logits.dtype).itemsize
    sub_min = {4: 8, 2: 16, 1: 32}.get(itemsize, 8)        # min sublane tile per dtype

    # --- per-generation budgets (f32 compute footprint, not input itemsize) ---
    vmem_cap = _tpu_vmem_bytes()
    big_vmem = vmem_cap >= 96 * 1024 * 1024                # v5e/v6e: 128 MiB VMEM
    budget = (8 if big_vmem else 4) * 1024 * 1024          # per logits tile, in f32
    row_cap = 8192 if big_vmem else 4096
    vmem_limit = (64 if big_vmem else 40) * 1024 * 1024

    # --- class tile ---
    c_lanes = _round_up(C, 128)
    if block_classes is not None:
        tc = int(block_classes)
    elif c_lanes * 4 * 256 <= budget:
        tc = C                                             # whole class dim per block
    else:
        tc = budget // (256 * 4)                           # keep >= 256 rows per tile
    if tc >= C:
        tc = C
        c_pad = C
    else:
        tc = max(128, (tc // 128) * 128)                   # lane-dense class tiles
        c_pad = _round_up(C, tc)
    num_tiles_c = c_pad // tc
    mask_classes = c_pad != C
    tc_lanes = _round_up(tc, 128)

    # --- row tile ---
    rows_fit = max(sub_min, budget // (tc_lanes * 4))      # f32 footprint per row
    if block_rows is not None:
        tn = max(sub_min, _round_up(int(block_rows), sub_min))
    elif N <= 256:
        tn = _round_up(N, sub_min)                         # single small tile
    else:
        # >= 2 row tiles so both v7x TensorCores get work; biggest tile that fits
        tn = min(row_cap, rows_fit, _round_up((N + 1) // 2, 128))
        tn = max(128, (tn // 128) * 128)
    n_pad = _round_up(N, tn)
    num_tiles_n = n_pad // tn

    # --- pad inputs (rows / classes); padded rows are masked in-kernel ---
    pad_r, pad_c = n_pad - N, c_pad - C
    logits_p = logits if (pad_r == 0 and pad_c == 0) else jnp.pad(
        logits, ((0, pad_r), (0, pad_c)))
    tgt = targets.astype(jnp.int32)
    tgt_p = tgt if pad_r == 0 else jnp.pad(tgt, (0, pad_r))
    tgt_row = tgt_p.reshape(1, n_pad)                      # lane-dense targets

    kernel = functools.partial(
        _focal_loss_kernel,
        alpha=float(alpha), gamma=float(gamma),
        n_true=int(N), c_true=int(C), tn=int(tn), tc=int(tc),
        mask_classes=bool(mask_classes),
    )

    partial_sums = pl.pallas_call(
        kernel,
        out_shape=jax.ShapeDtypeStruct((num_tiles_n, 1), jnp.float32),
        grid_spec=pltpu.PrefetchScalarGridSpec(
            num_scalar_prefetch=0,
            grid=(num_tiles_n, num_tiles_c),
            in_specs=[
                pl.BlockSpec((1, tn), lambda i, j: (0, i)),     # targets (lane-dense)
                pl.BlockSpec((tn, tc), lambda i, j: (i, j)),    # logits tile
            ],
            out_specs=pl.BlockSpec((1, 1), lambda i, j: (i, 0)),  # per-tile partial sum
            scratch_shapes=[pltpu.VMEM((tn, 1), jnp.float32)] * 3,
        ),
        compiler_params=pltpu.CompilerParams(
            dimension_semantics=("parallel", "arbitrary"),
            vmem_limit_bytes=int(vmem_limit),
        ),
        cost_estimate=pl.CostEstimate(
            flops=8 * N * C,
            transcendentals=N * (C + 3),
            bytes_accessed=n_pad * c_pad * itemsize + n_pad * 4 + num_tiles_n * 4,
        ),
    )(tgt_row, logits_p)

    # tiny (num_tiles_n,) reduction + mean by the true N
    return jnp.sum(partial_sums) * jnp.float32(1.0 / float(N))


def _focal_loss_ref(logits, targets, alpha=ALPHA, gamma=GAMMA):
    """Pure-JAX reference matching the PyTorch module (f32 math)."""
    logits = logits.astype(jnp.float32)
    lse = jax.nn.logsumexp(logits, axis=-1)
    tgt_logit = jnp.take_along_axis(logits, targets[:, None], axis=-1)[:, 0]
    ce = lse - tgt_logit
    pt = jnp.exp(-ce)
    f_loss = alpha * (1.0 - pt) ** gamma * ce
    return jnp.mean(f_loss)


if __name__ == "__main__":
    key = jax.random.PRNGKey(0)
    k1, k2, k3, k4, k5, k6, k7, k8 = jax.random.split(key, 8)

    # Test 1: small single-tile case (batch=8, classes=32), f32.
    N, C = 8, 32
    logits = jax.random.normal(k1, (N, C), dtype=jnp.float32)
    targets = jax.random.randint(k2, (N,), 0, C, dtype=jnp.int32)
    out = jax.block_until_ready(focal_loss(logits, targets))
    ref = _focal_loss_ref(logits, targets)
    assert jnp.allclose(out, ref, rtol=1e-5, atol=1e-5), (out, ref)

    # Test 2: multiple row tiles + padded last tile (batch=300, 3 tiles of 128), f32.
    N2, C2 = 300, 32
    logits2 = jax.random.normal(k3, (N2, C2), dtype=jnp.float32)
    targets2 = jax.random.randint(k4, (N2,), 0, C2, dtype=jnp.int32)
    out2 = jax.block_until_ready(focal_loss(logits2, targets2, block_rows=128))
    ref2 = _focal_loss_ref(logits2, targets2)
    assert jnp.allclose(out2, ref2, rtol=1e-5, atol=1e-5), (out2, ref2)

    # Test 3: bf16 logits (compare/max stay bf16 in-kernel, f32 exp/LSE math).
    logits_bf16 = logits2.astype(jnp.bfloat16)
    out3 = jax.block_until_ready(focal_loss(logits_bf16, targets2, block_rows=128))
    ref3 = _focal_loss_ref(logits_bf16, targets2)
    assert jnp.allclose(out3, ref3, rtol=1e-3, atol=1e-3), (out3, ref3)

    # Test 4: class-tiled path (online LSE + class-padding mask), f32.
    N4, C4 = 300, 200
    logits4 = jax.random.normal(k5, (N4, C4), dtype=jnp.float32)
    targets4 = jax.random.randint(k6, (N4,), 0, C4, dtype=jnp.int32)
    out4 = jax.block_until_ready(
        focal_loss(logits4, targets4, block_rows=128, block_classes=128))
    ref4 = _focal_loss_ref(logits4, targets4)
    assert jnp.allclose(out4, ref4, rtol=1e-5, atol=1e-5), (out4, ref4)

    # Test 5: default auto-tiling (>=2 row tiles so both v7x TCs get work), f32.
    N5, C5 = 600, 64
    logits5 = jax.random.normal(k7, (N5, C5), dtype=jnp.float32)
    targets5 = jax.random.randint(k8, (N5,), 0, C5, dtype=jnp.int32)
    out5 = jax.block_until_ready(focal_loss(logits5, targets5))
    ref5 = _focal_loss_ref(logits5, targets5)
    assert jnp.allclose(out5, ref5, rtol=1e-5, atol=1e-5), (out5, ref5)

    print("KERNEL_OK")
</pallas_src>

<mosaic_0001>
module attributes {stable_mosaic.version = 11 : i64} {
  func.func @_focal_loss_kernel(%arg0: i32, %arg1: i32, %arg2: memref<1x8xi32, #tpu.memory_space<vmem>>, %arg3: memref<8x32xf32, #tpu.memory_space<vmem>>, %arg4: memref<1x1xf32, #tpu.memory_space<vmem>>, %arg5: memref<8x1xf32, #tpu.memory_space<vmem>>, %arg6: memref<8x1xf32, #tpu.memory_space<vmem>>, %arg7: memref<8x1xf32, #tpu.memory_space<vmem>>) attributes {dimension_semantics = [#tpu.dimension_semantics<parallel>, #tpu.dimension_semantics<arbitrary>], iteration_bounds = array<i64: 1, 1>, scalar_prefetch = 0 : i64, scratch_operands = 3 : i64, tpu.core_type = #tpu.core_type<tc>, window_params = [{transform_indices = @transform_0, window_bounds = array<i64: 1, 8>}, {transform_indices = @transform_1, window_bounds = array<i64: 8, 32>}, {transform_indices = @transform_2, window_bounds = array<i64: 1, 1>}]} {
    %c0_i32 = arith.constant 0 : i32
    %0 = arith.cmpi eq, %arg1, %c0_i32 : i32
    %1 = arith.extui %0 : i1 to i32
    %c0_i32_0 = arith.constant 0 : i32
    %2 = arith.cmpi ne, %1, %c0_i32_0 : i32
    scf.if %2 {
      %cst_21 = arith.constant 0xFF800000 : f32
      %38 = vector.broadcast %cst_21 : f32 to vector<8x1xf32>
      %c0_22 = arith.constant 0 : index
      %c0_23 = arith.constant 0 : index
      %39 = vector.load %arg5[%c0_22, %c0_23] : memref<8x1xf32, #tpu.memory_space<vmem>>, vector<8x1xf32>
      tpu.vector_store %arg5[%c0_22, %c0_23], %38 {strides = array<i32>} : memref<8x1xf32, #tpu.memory_space<vmem>>, vector<8x1xf32>,
      %cst_24 = arith.constant 0.000000e+00 : f32
      %40 = vector.broadcast %cst_24 : f32 to vector<8x1xf32>
      %c0_25 = arith.constant 0 : index
      %c0_26 = arith.constant 0 : index
      %41 = vector.load %arg6[%c0_25, %c0_26] : memref<8x1xf32, #tpu.memory_space<vmem>>, vector<8x1xf32>
      tpu.vector_store %arg6[%c0_25, %c0_26], %40 {strides = array<i32>} : memref<8x1xf32, #tpu.memory_space<vmem>>, vector<8x1xf32>,
      %cst_27 = arith.constant 0.000000e+00 : f32
      %42 = vector.broadcast %cst_27 : f32 to vector<8x1xf32>
      %c0_28 = arith.constant 0 : index
      %c0_29 = arith.constant 0 : index
      %43 = vector.load %arg7[%c0_28, %c0_29] : memref<8x1xf32, #tpu.memory_space<vmem>>, vector<8x1xf32>
      tpu.vector_store %arg7[%c0_28, %c0_29], %42 {strides = array<i32>} : memref<8x1xf32, #tpu.memory_space<vmem>>, vector<8x1xf32>,
    } else {
    }
    %c0 = arith.constant 0 : index
    %c0_1 = arith.constant 0 : index
    %3 = vector.load %arg3[%c0, %c0_1] : memref<8x32xf32, #tpu.memory_space<vmem>>, vector<8x32xf32>
    %c0_2 = arith.constant 0 : index
    %c0_3 = arith.constant 0 : index
    %4 = vector.load %arg2[%c0_2, %c0_3] : memref<1x8xi32, #tpu.memory_space<vmem>>, vector<1x8xi32>
    %5 = vector.shape_cast %4 : vector<1x8xi32> to vector<8x1xi32>
    %c32_i32 = arith.constant 32 : i32
    %6 = arith.muli %arg1, %c32_i32 : i32
    %7 = tpu.iota {dimensions = array<i32: 1>} : vector<8x32xi32>
    %8 = vector.broadcast %6 : i32 to vector<8x32xi32>
    %9 = arith.addi %8, %7 : vector<8x32xi32>
    %10 = vector.broadcast %5 : vector<8x1xi32> to vector<8x32xi32>
    %11 = arith.cmpi eq, %9, %10 : vector<8x32xi32>
    %cst = arith.constant 0.000000e+00 : f32
    %12 = vector.broadcast %cst : f32 to vector<8x32xf32>
    %13 = arith.select %11, %3, %12 : vector<8x32xi1>, vector<8x32xf32>
    %cst_4 = arith.constant dense<0.000000e+00> : vector<8xf32>
    %14 = vector.multi_reduction <add>, %13, %cst_4 [1] : vector<8x32xf32> to vector<8xf32>
    %15 = vector.shape_cast %14 : vector<8xf32> to vector<8x1xf32>
    %c0_5 = arith.constant 0 : index
    %c0_6 = arith.constant 0 : index
    %16 = vector.load %arg7[%c0_5, %c0_6] : memref<8x1xf32, #tpu.memory_space<vmem>>, vector<8x1xf32>
    %17 = arith.addf %16, %15 : vector<8x1xf32>
    %c0_7 = arith.constant 0 : index
    %c0_8 = arith.constant 0 : index
    %18 = vector.load %arg7[%c0_7, %c0_8] : memref<8x1xf32, #tpu.memory_space<vmem>>, vector<8x1xf32>
    tpu.vector_store %arg7[%c0_7, %c0_8], %17 {strides = array<i32>} : memref<8x1xf32, #tpu.memory_space<vmem>>, vector<8x1xf32>,
    %c0_9 = arith.constant 0 : index
    %c0_10 = arith.constant 0 : index
    %19 = vector.load %arg5[%c0_9, %c0_10] : memref<8x1xf32, #tpu.memory_space<vmem>>, vector<8x1xf32>
    %cst_11 = arith.constant dense<0xFF800000> : vector<8xf32>
    %20 = vector.multi_reduction <maximumf>, %3, %cst_11 [1] : vector<8x32xf32> to vector<8xf32>
    %21 = vector.shape_cast %20 : vector<8xf32> to vector<8x1xf32>
    %22 = arith.maximumf %19, %21 : vector<8x1xf32>
    %23 = vector.broadcast %22 : vector<8x1xf32> to vector<8x32xf32>
    %24 = arith.subf %3, %23 : vector<8x32xf32>
    %25 = math.exp %24 : vector<8x32xf32>
    %cst_12 = arith.constant dense<0.000000e+00> : vector<8xf32>
    %26 = vector.multi_reduction <add>, %25, %cst_12 [1] : vector<8x32xf32> to vector<8xf32>
    %27 = vector.shape_cast %26 : vector<8xf32> to vector<8x1xf32>
    %c0_13 = arith.constant 0 : index
    %c0_14 = arith.constant 0 : index
    %28 = vector.load %arg6[%c0_13, %c0_14] : memref<8x1xf32, #tpu.memory_space<vmem>>, vector<8x1xf32>
    %29 = arith.subf %19, %22 : vector<8x1xf32>
    %30 = math.exp %29 : vector<8x1xf32>
    %31 = arith.mulf %28, %30 : vector<8x1xf32>
    %32 = arith.addf %31, %27 : vector<8x1xf32>
    %c0_15 = arith.constant 0 : index
    %c0_16 = arith.constant 0 : index
    %33 = vector.load %arg6[%c0_15, %c0_16] : memref<8x1xf32, #tpu.memory_space<vmem>>, vector<8x1xf32>
    tpu.vector_store %arg6[%c0_15, %c0_16], %32 {strides = array<i32>} : memref<8x1xf32, #tpu.memory_space<vmem>>, vector<8x1xf32>,
    %c0_17 = arith.constant 0 : index
    %c0_18 = arith.constant 0 : index
    %34 = vector.load %arg5[%c0_17, %c0_18] : memref<8x1xf32, #tpu.memory_space<vmem>>, vector<8x1xf32>
    tpu.vector_store %arg5[%c0_17, %c0_18], %22 {strides = array<i32>} : memref<8x1xf32, #tpu.memory_space<vmem>>, vector<8x1xf32>,
    %c0_i32_19 = arith.constant 0 : i32
    %35 = arith.cmpi eq, %arg1, %c0_i32_19 : i32
    %36 = arith.extui %35 : i1 to i32
    %c0_i32_20 = arith.constant 0 : i32
    %37 = arith.cmpi ne, %36, %c0_i32_20 : i32
    scf.if %37 {
      %c0_21 = arith.constant 0 : index
      %c0_22 = arith.constant 0 : index
      %38 = vector.load %arg5[%c0_21, %c0_22] : memref<8x1xf32, #tpu.memory_space<vmem>>, vector<8x1xf32>
      %c0_23 = arith.constant 0 : index
      %c0_24 = arith.constant 0 : index
      %39 = vector.load %arg6[%c0_23, %c0_24] : memref<8x1xf32, #tpu.memory_space<vmem>>, vector<8x1xf32>
      %40 = math.log %39 : vector<8x1xf32>
      %41 = arith.addf %38, %40 : vector<8x1xf32>
      %c0_25 = arith.constant 0 : index
      %c0_26 = arith.constant 0 : index
      %42 = vector.load %arg7[%c0_25, %c0_26] : memref<8x1xf32, #tpu.memory_space<vmem>>, vector<8x1xf32>
      %43 = arith.subf %41, %42 : vector<8x1xf32>
      %cst_27 = arith.constant 0.000000e+00 : f32
      %44 = vector.broadcast %cst_27 : f32 to vector<8x1xf32>
      %45 = arith.maximumf %43, %44 : vector<8x1xf32>
      %cst_28 = arith.constant 0.000000e+00 : f32
      %46 = vector.broadcast %cst_28 : f32 to vector<8x1xf32>
      %47 = arith.subf %46, %45 : vector<8x1xf32>
      %48 = math.exp %47 : vector<8x1xf32>
      %cst_29 = arith.constant 1.000000e+00 : f32
      %49 = vector.broadcast %cst_29 : f32 to vector<8x1xf32>
      %50 = arith.subf %49, %48 : vector<8x1xf32>
      %51 = arith.mulf %50, %50 : vector<8x1xf32>
      %cst_30 = arith.constant 4.000000e-01 : f32
      %52 = vector.broadcast %cst_30 : f32 to vector<8x1xf32>
      %53 = arith.mulf %52, %51 : vector<8x1xf32>
      %54 = arith.mulf %53, %45 : vector<8x1xf32>
      %c8_i32 = arith.constant 8 : i32
      %55 = arith.muli %arg0, %c8_i32 : i32
      %56 = tpu.iota {dimensions = array<i32: 0>} : vector<8x1xi32>
      %57 = vector.broadcast %55 : i32 to vector<8x1xi32>
      %58 = arith.addi %57, %56 : vector<8x1xi32>
      %c8_i32_31 = arith.constant 8 : i32
      %59 = vector.broadcast %c8_i32_31 : i32 to vector<8x1xi32>
      %60 = arith.cmpi slt, %58, %59 : vector<8x1xi32>
      %cst_32 = arith.constant 0.000000e+00 : f32
      %61 = vector.broadcast %cst_32 : f32 to vector<8x1xf32>
      %62 = arith.select %60, %54, %61 : vector<8x1xi1>, vector<8x1xf32>
      %cst_33 = arith.constant dense<0.000000e+00> : vector<1xf32>
      %63 = vector.multi_reduction <add>, %62, %cst_33 [0] : vector<8x1xf32> to vector<1xf32>
      %64 = vector.shape_cast %63 : vector<1xf32> to vector<1x1xf32>
      %c0_34 = arith.constant 0 : index
      %c0_35 = arith.constant 0 : index
      %65 = vector.load %arg4[%c0_34, %c0_35] : memref<1x1xf32, #tpu.memory_space<vmem>>, vector<1x1xf32>
      tpu.vector_store %arg4[%c0_34, %c0_35], %64 {strides = array<i32>} : memref<1x1xf32, #tpu.memory_space<vmem>>, vector<1x1xf32>,
    } else {
    }
    return
  }
  func.func @transform_0(%arg0: i32, %arg1: i32) -> (i32, i32) {
    %c0_i32 = arith.constant 0 : i32
    %c0_i32_0 = arith.constant 0 : i32
    return %c0_i32, %arg0 : i32, i32
  }
  func.func @transform_1(%arg0: i32, %arg1: i32) -> (i32, i32) {
    %c0_i32 = arith.constant 0 : i32
    return %arg0, %arg1 : i32, i32
  }
  func.func @transform_2(%arg0: i32, %arg1: i32) -> (i32, i32) {
    %c0_i32 = arith.constant 0 : i32
    %c0_i32_0 = arith.constant 0 : i32
    return %arg0, %c0_i32 : i32, i32
  }
}

</mosaic_0001>

<bundles_post_ra>
// kernel: tpu_custom_call.1
= control target key start
LH: loop header
LB: loop body
LE: loop exit
PB: predicated region body
PF: predicated region fallthrough
CT: control target
= control target key end

     0   :  { %7 = vsyncpa [#allocation6], 0  ;;  %s264_s0 = inlined_call_operand.hbm [shape: s32[1,8], index: 0, kind: input, shape index: {}]   ;;  %s265_s1 = inlined_call_operand.hbm [shape: f32[8,32], index: 1, kind: input, shape index: {}]   ;;  %s266_s2 = inlined_call_operand.hbm [shape: f32[1,1], index: 2, kind: output, shape index: {}]  }
   0x1   :  { %8 = vsyncpa [#allocation9], 0 }
   0x2   :  { %9 = vsyncpa [#allocation7], 0  ;;  %s224_s9 = smov [#allocation5]   ;;  %s225_s11 = smov [#allocation8]  }
   0x3   :  { %s16_s10 = sshll.u32 %s224_s9, 4  ;;  %s26_s12 = sshll.u32 %s225_s11, 4  ;;  %s17_s10 = int_to_ptr.vmem [resolvable:$true] %s16_s10  ;;  %s27_s12 = int_to_ptr.vmem [resolvable:$true] %s26_s12 }
   0x4   :  { %s166_s13 = scalar_lea.vmem %s17_s10, 16  ;;  %s170_s14 = scalar_lea.vmem %s17_s10, 32 }
   0x5   :  { %p167_p0 = scmp.ne.s32.totalorder %s17_s10, %s166_s13  ;;  %p171_p1 = scmp.lt.s32.totalorder %s17_s10, %s17_s10 }
   0x6   :  { %p172_p2 = scmp.lt.s32.totalorder %s170_s14, %s166_s13 }
   0x8   :  { %p173_p3 = por %p172_p2, %p171_p1 }
   0xa   :  { %p174_p4 = pnand %p173_p3, %p167_p0 }
   0xc   :  { %177 = shalt.err (!%p174_p4)
}
   0xd   :  { %19 = dma.hbm_to_vmem [thread:$0]  %s264_s0, 16, %s17_s10, [#allocation6]  }
   0xe   :  { %s186_s17 = scalar_lea.vmem %s27_s12, 128  ;;  %p191_p6 = scmp.lt.s32.totalorder %s27_s12, %s27_s12 }
   0xf   :  { %p187_p5 = scmp.ne.s32.totalorder %s27_s12, %s186_s17  ;;  %p192_p7 = scmp.lt.s32.totalorder %s186_s17, %s186_s17 }
  0x11   :  { %p193_p8 = por %p192_p7, %p191_p6 }
  0x13   :  { %p194_p9 = pnand %p193_p8, %p187_p5 }
  0x15   :  { %197 = shalt.err (!%p194_p9)
}
  0x16   :  { %29 = dma.hbm_to_vmem [thread:$0]  %s265_s1, 128, %s27_s12, [#allocation9]  }
  0x17   :  { %218 = dma.done.wait [#allocation6], 16  }
  0x18   :  { %219 = vsyncadd [#allocation6], 4294967280 }
  0x19   :  { %220 = dma.done.wait [#allocation9], 128  }
  0x1a   :  { %221 = vsyncadd [#allocation9], 4294967168  ;;  %vm40_vm0 = vcmask 7168   ;;  %v226_v0 = vmov -inf   ;;  %vm60_vm1 = vcmask 261120   ;;  %v44_v1 = vld [vmem:[#allocation8] sm:$0xff]  ;;  %v54_v13 = vlaneseq }
  0x1b   :  { %41 = vst.msk [vmem:[#allocation2] sm:$0xff] %vm40_vm0, %v226_v0  ;;  %v69_v2 = vsel %vm60_vm1, %v44_v1, -inf  ;;  %v227_v3 = vmov 0   ;;  %v142_v4 = vld [vmem:[#allocation5] ss:$0 sm:$0xff]  ;;  %v228_v5 = vmov 0.0  }
  0x1c   :  { %70 = vmax.xlane.f32.xlu0 %v69_v2  ;;  %51 = vbcast.lane.b32.xlu1 %v142_v4, 256  ;;  %42 = vst.msk [vmem:[#allocation3] sm:$0xff] %vm40_vm0, %v228_v5  ;;  %43 = vst.msk [vmem:[#allocation4] sm:$0xff] %vm40_vm0, %v228_v5  ;;  %v55_v14 = vand.u32 127, %v54_v13  ;;  %s229_s0 = smov [#allocation10]   ;;  %vm124_vm3 = vcmask 0  }
  0x1d   :  { %149 = vset.pattern.permute.xlu0 %v227_v3  ;;  %s132_s1 = sshll.u32 %s229_s0, 4  ;;  %s133_s1 = int_to_ptr.vmem [resolvable:$true] %s132_s1 }
  0x1e   :  { %s198_s20 = scalar_lea.vmem %s133_s1, 16  ;;  %s202_s21 = scalar_lea.vmem %s133_s1, 32 }
  0x1f   :  { %p199_p10 = scmp.ne.s32.totalorder %s133_s1, %s198_s20  ;;  %p203_p11 = scmp.lt.s32.totalorder %s133_s1, %s133_s1 }
  0x20   :  { %p204_p12 = scmp.lt.s32.totalorder %s202_s21, %s198_s20 }
  0x22   :  { %v68_v6 = vld [vmem:[#allocation2] sm:$0xff]  ;;  %p205_p13 = por %p204_p12, %p203_p11 }
  0x23   :  { %v84_v22 = vld [vmem:[#allocation3] sm:$0xff]  ;;  %v64_v26 = vld [vmem:[#allocation4] sm:$0xff] }
  0x24   :  { %p206_p0 = pnand %p205_p13, %p199_p10 }
  0x8e   :  { %v52_v15 = vpop.permute.xlu1 %51 }
  0x8f   :  { %vm58_vm2 = vcmp.eq.s32.totalorder %v55_v14, %v52_v15 }
  0x90   :  { %v59_v17 = vsel %vm58_vm2, %v44_v1, 0.0 }
  0x91   :  { %v61_v19 = vsel %vm60_vm1, %v59_v17, 0.0 }
  0xa5   :  { %v71_v7 = vpop.xlane.xlu0 %70 }
  0xa6   :  { %v72_v8 = vmax.f32 %v68_v6, %v71_v7 }
  0xa8   :  { %v85_v9 = vsub.f32 %v68_v6, %v72_v8  ;;  %91 = vst.msk [vmem:[#allocation2] sm:$0xff] %vm40_vm0, %v72_v8  ;;  %75 = vperm.xlu0 %149, %v72_v8  }
  0xaa   :  { %v86_v20 = vmul.f32 1.442695, %v85_v9 }
  0xaf   :  { %v95_v32 = vld [vmem:[#allocation2] sm:$0xff] }
 0x123   :  { %v76_v10 = vpop.permute.xlu0 %75 }
 0x124   :  { %v78_v11 = vsub.f32 %v44_v1, %v76_v10 }
 0x126   :  { %v79_v12 = vmul.f32 1.442695, %v78_v11 }
 0x128   :  { %150 = vpow2.f32 %v79_v12 }
 0x129   :  { %152 = vpow2.f32 %v86_v20 }
 0x135   :  { %v151_v16 = vpop.eup %150 }
 0x136   :  { %v81_v18 = vsel %vm60_vm1, %v151_v16, 0.0  ;;  %v153_v21 = vpop.eup %152 }
 0x137   :  { %82 = vadd.xlane.f32.xlu1 %v81_v18  ;;  %v88_v23 = vmul.f32 %v153_v21, %v84_v22 }
 0x13b   :  { %62 = vadd.xlane.f32.xlu1 %v61_v19 }
 0x1c0   :  { %v83_v24 = vpop.xlane.xlu1 %82 }
 0x1c1   :  { %v89_v25 = vadd.f32 %v88_v23, %v83_v24 }
 0x1c3   :  { %90 = vst.msk [vmem:[#allocation3] sm:$0xff] %vm40_vm0, %v89_v25 }
 0x1c4   :  { %v63_v27 = vpop.xlane.xlu1 %62 }
 0x1c5   :  { %v65_v28 = vadd.f32 %v64_v26, %v63_v27 }
 0x1c7   :  { %67 = vst.msk [vmem:[#allocation4] sm:$0xff] %vm40_vm0, %v65_v28 }
 0x1ca   :  { %v96_v29 = vld [vmem:[#allocation3] sm:$0xff] }
 0x1cb   :  { %154 = vlog2.f32 %v96_v29 }
 0x1ce   :  { %v100_v33 = vld [vmem:[#allocation4] sm:$0xff] }
 0x1d8   :  { %v155_v30 = vpop.eup %154 }
 0x1d9   :  { %v98_v31 = vmul.f32 0.6931472, %v155_v30 }
 0x1db   :  { %v99_v34 = vadd.f32 %v98_v31, %v95_v32 }
 0x1dd   :  { %v101_v35 = vsub.f32 %v99_v34, %v100_v33 }
 0x1df   :  { %v102_v36 = vmax.f32 %v101_v35, 0.0 }
 0x1e1   :  { %v103_v37 = vsub.f32 0.0, %v102_v36 }
 0x1e3   :  { %v104_v38 = vmul.f32 1.442695, %v103_v37 }
 0x1e5   :  { %156 = vpow2.f32 %v104_v38 }
 0x1f2   :  { %v157_v39 = vpop.eup %156 }
 0x1f3   :  { %v106_v40 = vsub.f32 1.0, %v157_v39 }
 0x1f5   :  { %v107_v41 = vmul.f32 %v106_v40, %v106_v40 }
 0x1f7   :  { %v108_v42 = vmul.f32 0.4, %v107_v41 }
 0x1f9   :  { %v109_v43 = vmul.f32 %v108_v42, %v102_v36 }
 0x1fb   :  { %v117_v44 = vsel %vm40_vm0, %v109_v43, 0.0 }
 0x1fc   :  { %v118_v45 = vrot.slane %v117_v44, 4 }
 0x1fe   :  { %v119_v46 = vadd.f32 %v118_v45, %v117_v44 }
 0x200   :  { %v120_v47 = vrot.slane %v119_v46, 2 }
 0x202   :  { %v121_v48 = vadd.f32 %v120_v47, %v119_v46 }
 0x204   :  { %v122_v49 = vrot.slane %v121_v48, 1 }
 0x206   :  { %v123_v50 = vadd.f32 %v122_v49, %v121_v48 }
 0x208   :  { %125 = vst.msk [vmem:[#allocation10] sm:$0x1] %vm124_vm3, %v123_v50 }
 0x209   :  { %209 = shalt.err (!%p206_p0)
}
 0x20a   :  { %135 = dma.vmem_to_hbm [thread:$0]  %s133_s1, 16, %s266_s2, [#allocation7]  }
 0x20b   :  { %222 = dma.done.wait [#allocation7], 16  }
 0x20c   :  { %223 = vsyncadd [#allocation7], 4294967280 }
 0x20d   :  { %139 = vsyncpa [#allocation6], 1 }
 0x20e   :  { %140 = vsyncpa [#allocation9], 1 }
 0x20f   :  { %141 = vsyncpa [#allocation7], 1 }

</bundles_post_ra>
